<compile_context>
chip_gen: v5e
topology: v5e:2x2
jax: 0.10.0
libtpu: 0.0.40
codegen_flags: <defaults>
</compile_context>

<pallas_src>
import jax
import jax.numpy as jnp
from jax.experimental import pallas as pl
from jax.experimental.pallas import tpu as pltpu


def _copy_kernel(x_ref, o_ref):
    # Pure passthrough of the current tile.
    o_ref[...] = x_ref[...]


def _lane_dense_2d(total: int, fallback):
    """Pick a (rows, cols) flattening with cols a large multiple of 128."""
    for k in (4096, 2048, 1024, 512, 256, 128):
        if total % k == 0:
            return total // k, k
    return fallback


def pallas_identity(x: jax.Array) -> jax.Array:
    """Identity copy of an NCHW tensor, executed as a tiled Pallas TPU kernel."""
    n, c, h, w = x.shape
    total = n * c * h * w
    # Lane-dense reshape: last dim a big multiple of 128 when possible so the
    # output stores lower to unmasked vst instead of masked partial stores.
    rows, cols = _lane_dense_2d(total, (n * c, h * w))
    x2d = x.reshape(rows, cols)

    # Tile sizes: (8,128)-aligned (or equal to the full dim), large enough to
    # amortize the ~0.35 us per-grid-step overhead, small enough that
    # (1 in + 1 out) x 2 double buffers stays far below v7x's 64 MiB VMEM.
    tm = rows if rows <= 512 else 512        # 512 is a multiple of 8
    tn = cols if cols <= 2048 else 2048      # 2048 is a multiple of 128
    grid = (pl.cdiv(rows, tm), pl.cdiv(cols, tn))

    # NOTE: for a pure passthrough the cheapest option of all is
    # input_output_aliases={0: 0} (or simply returning x); we keep a real copy
    # here so the kernel exercises the HBM<->VMEM pipeline and the __main__
    # correctness check can compare y against a still-live x.
    out2d = pl.pallas_call(
        _copy_kernel,
        out_shape=jax.ShapeDtypeStruct((rows, cols), x.dtype),
        grid=grid,
        in_specs=[pl.BlockSpec((tm, tn), lambda i, j: (i, j))],
        out_specs=pl.BlockSpec((tm, tn), lambda i, j: (i, j)),
        compiler_params=pltpu.CompilerParams(
            # Both axes are independent -> shardable across the 2 TCs on v7x.
            dimension_semantics=("parallel", "parallel"),
            # Explicit budget: 2 x 2 x 4 MiB = 16 MiB worst case, well inside.
            vmem_limit_bytes=32 * 1024 * 1024,
        ),
    )(x2d)

    return out2d.reshape(n, c, h, w)


class GraspFormer:
    """JAX/Pallas mirror of the (empty) PyTorch GraspFormer module."""

    def __init__(self, verbose: bool = False):
        self.verbose = verbose
        # Reference __init__ defines no parameters; nothing to initialize.

    def forward(self, x):
        # Exact semantics of the reference: forward() is `pass` -> returns None.
        return None

    def __call__(self, x):
        return self.forward(x)


if __name__ == "__main__":
    key = jax.random.PRNGKey(0)
    x = jax.random.normal(key, (2, 4, 16, 16), dtype=jnp.float32)  # NCHW

    # Exercise the module (matches PyTorch: returns None).
    model = GraspFormer(verbose=False)
    out = model(x)
    assert out is None

    # Exercise the Pallas identity kernel (the stand-in hot path) at the small
    # test shape ...
    y = pallas_identity(x)
    jax.block_until_ready(y)
    assert y.shape == x.shape and y.dtype == x.dtype
    assert bool(jnp.all(y == x))

    # ... and at a larger shape where the tiling / pipelining actually matters
    # (2048 x 4096 f32 = 32 MiB -> grid (4, 2), 512x2048 tiles).
    xl = jax.random.normal(jax.random.PRNGKey(1), (4, 8, 256, 1024), jnp.float32)
    yl = pallas_identity(xl)
    jax.block_until_ready(yl)
    assert yl.shape == xl.shape and bool(jnp.all(yl == xl))

    print("KERNEL_OK")
</pallas_src>

<mosaic_0001>
module attributes {stable_mosaic.version = 11 : i64} {
  func.func @_copy_kernel(%arg0: i32, %arg1: i32, %arg2: memref<1x2048xf32, #tpu.memory_space<vmem>>, %arg3: memref<1x2048xf32, #tpu.memory_space<vmem>>) attributes {dimension_semantics = [#tpu.dimension_semantics<parallel>, #tpu.dimension_semantics<parallel>], iteration_bounds = array<i64: 1, 1>, scalar_prefetch = 0 : i64, scratch_operands = 0 : i64, tpu.core_type = #tpu.core_type<tc>, window_params = [{transform_indices = @transform_0, window_bounds = array<i64: 1, 2048>}, {transform_indices = @transform_1, window_bounds = array<i64: 1, 2048>}]} {
    %c0 = arith.constant 0 : index
    %c0_0 = arith.constant 0 : index
    %0 = vector.load %arg2[%c0, %c0_0] : memref<1x2048xf32, #tpu.memory_space<vmem>>, vector<1x2048xf32>
    %c0_1 = arith.constant 0 : index
    %c0_2 = arith.constant 0 : index
    %1 = vector.load %arg3[%c0_1, %c0_2] : memref<1x2048xf32, #tpu.memory_space<vmem>>, vector<1x2048xf32>
    tpu.vector_store %arg3[%c0_1, %c0_2], %0 {strides = array<i32>} : memref<1x2048xf32, #tpu.memory_space<vmem>>, vector<1x2048xf32>,
    return
  }
  func.func @transform_0(%arg0: i32, %arg1: i32) -> (i32, i32) {
    %c0_i32 = arith.constant 0 : i32
    return %arg0, %arg1 : i32, i32
  }
  func.func @transform_1(%arg0: i32, %arg1: i32) -> (i32, i32) {
    %c0_i32 = arith.constant 0 : i32
    return %arg0, %arg1 : i32, i32
  }
}

</mosaic_0001>

<bundles_post_ra>
// kernel: tpu_custom_call.1
= control target key start
LH: loop header
LB: loop body
LE: loop exit
PB: predicated region body
PF: predicated region fallthrough
CT: control target
= control target key end

     0   :  { %6 = vsyncpa [#allocation3], 0  ;;  %s116_s0 = inlined_call_operand.hbm [shape: f32[1,2048], index: 0, kind: input, shape index: {}]   ;;  %s117_s1 = inlined_call_operand.hbm [shape: f32[1,2048], index: 1, kind: output, shape index: {}]  }
   0x1   :  { %7 = vsyncpa [#allocation4], 0  ;;  %s13_s8 = sshll.u32 %s116_s0, 4  ;;  %s98_s9 = smov [#allocation2]   ;;  %s14_s8 = int_to_ptr.hbm [resolvable:$true] %s13_s8 }
   0x2   :  { %s15_s10 = sshll.u32 %s98_s9, 4  ;;  %s16_s10 = int_to_ptr.vmem [resolvable:$true] %s15_s10 }
   0x3   :  { %18 = dma.hbm_to_vmem [thread:$0]  %s14_s8, 256, %s16_s10, [#allocation3]  }
   0x4   :  { %94 = dma.done.wait [#allocation3], 256  }
   0x5   :  { %95 = vsyncadd [#allocation3], 4294967040  ;;  %s99_s11 = smov [#allocation5]   ;;  %s34_s15 = sshll.u32 %s117_s1, 4  ;;  %v23_v0 = vld [vmem:[#allocation2] sm:$0xff]  ;;  %v24_v1 = vld [vmem:[#allocation2 + $0x8] sm:$0xff]  ;;  %s35_s15 = int_to_ptr.hbm [resolvable:$true] %s34_s15 }
   0x6   :  { %s32_s12 = sshll.u32 %s99_s11, 4  ;;  %25 = vst [vmem:[#allocation5] sm:$0xff] %v23_v0  ;;  %s33_s12 = int_to_ptr.vmem [resolvable:$true] %s32_s12 }
   0x7   :  { %26 = vst [vmem:[#allocation5 + $0x8] sm:$0xff] %v24_v1 }
   0x8   :  { %37 = dma.vmem_to_hbm [thread:$0]  %s33_s12, 256, %s35_s15, [#allocation4]  }
   0x9   :  { %96 = dma.done.wait [#allocation4], 256  }
   0xa   :  { %97 = vsyncadd [#allocation4], 4294967040 }
   0xb   :  { %42 = vsyncpa [#allocation3], 1 }
   0xc   :  { %43 = vsyncpa [#allocation4], 1 }

</bundles_post_ra>
